<compile_context>
chip_gen: v7x
topology: tpu7x:2x2x1
jax: 0.10.0
libtpu: 0.0.40
codegen_flags: <defaults>
</compile_context>

<pallas_src>
import functools
import math

import jax
import jax.numpy as jnp
from jax.experimental import pallas as pl
from jax.experimental.pallas import tpu as pltpu


def vpg_mean_kernel(x_ref, w1_ref, b1_ref, w2_ref, b2_ref, w3_ref, b3_ref,
                    mean_ref, *, compute_dtype, tanh_dtype):
    cd = compute_dtype
    # In-kernel cast of x to the matmul dtype (no extra HBM pass in the wrapper).
    x = x_ref[...].astype(cd)
    # layer 1: MXU matmul (f32 acc) -> f32 bias add -> tanh (bf16 on v6e/v7x, f32 on v5e)
    z1 = jnp.dot(x, w1_ref[...], preferred_element_type=jnp.float32) + b1_ref[...]
    h1 = jnp.tanh(z1.astype(tanh_dtype)).astype(cd)
    # layer 2
    z2 = jnp.dot(h1, w2_ref[...], preferred_element_type=jnp.float32) + b2_ref[...]
    h2 = jnp.tanh(z2.astype(tanh_dtype)).astype(cd)
    # output layer (num_actions < 128 -> masked lane stores; output bytes are tiny)
    mean_ref[...] = (
        jnp.dot(h2, w3_ref[...], preferred_element_type=jnp.float32) + b3_ref[...]
    ).astype(mean_ref.dtype)


def _round_up(n, m):
    return ((n + m - 1) // m) * m


def _bf16_eup():
    """bf16 VPU/EUP (tanh) path exists on v6e/v7x+, not on v2-v5."""
    try:
        kind = jax.devices()[0].device_kind.lower()
    except Exception:
        return False
    return not any(("v%d" % n) in kind for n in (2, 3, 4, 5))


def _tanh_dtype(compute_dtype):
    if jnp.dtype(compute_dtype) == jnp.dtype(jnp.bfloat16) and _bf16_eup():
        return jnp.bfloat16
    return jnp.float32


def _pick_block_batch(batch, block_batch):
    """Largest tile (multiple of 8, <= block_batch), but keep >= 2 balanced tiles
    when the batch allows so both v7x TensorCores get work on the parallel axis."""
    if batch <= 8:
        return 8
    two_way = _round_up(pl.cdiv(batch, 2), 8)
    return max(8, min(block_batch, two_way))


def vpg_forward(x, params, *, block_batch=8192, out_dtype=jnp.float32):
    """Returns (mean [batch, num_actions], std [num_actions] f32)."""
    batch, obs_dim = x.shape
    hidden = params["w1"].shape[1]
    num_actions = params["w3"].shape[1]
    cd = params["w1"].dtype           # matmul compute dtype (bf16 by default)
    td = _tanh_dtype(cd)

    bb = _pick_block_batch(batch, block_batch)
    grid = pl.cdiv(batch, bb)
    # No jnp.pad / astype here: ragged last tile handled by Pallas (OOB rows of the
    # output block are never written back; rows are computed independently).

    # VMEM budget: double-buffered x/mean tiles + resident weights + f32 [bb, hidden]
    # temporaries (pre-activations, h1, h2) + margin. Cap stays under v7x's scoped VMEM.
    io_bytes = 2 * bb * (obs_dim * x.dtype.itemsize
                         + num_actions * jnp.dtype(out_dtype).itemsize)
    w_bytes = 2 * (((obs_dim + hidden) * hidden + hidden * num_actions)
                   * jnp.dtype(cd).itemsize
                   + (2 * hidden + num_actions) * 4)
    tmp_bytes = 4 * bb * hidden * 4
    vmem_limit = int(min(max(io_bytes + w_bytes + tmp_bytes + (2 << 20), 8 << 20),
                         28 << 20))

    const = lambda i: (0, 0)
    kernel = functools.partial(vpg_mean_kernel, compute_dtype=cd, tanh_dtype=td)
    mean = pl.pallas_call(
        kernel,
        grid=(grid,),
        in_specs=[
            pl.BlockSpec((bb, obs_dim), lambda i: (i, 0)),   # x: tiled over batch
            pl.BlockSpec((obs_dim, hidden), const),          # W1 (VMEM-resident)
            pl.BlockSpec((1, hidden), const),                # b1
            pl.BlockSpec((hidden, hidden), const),           # W2
            pl.BlockSpec((1, hidden), const),                # b2
            pl.BlockSpec((hidden, num_actions), const),      # W3
            pl.BlockSpec((1, num_actions), const),           # b3
        ],
        out_specs=pl.BlockSpec((bb, num_actions), lambda i: (i, 0)),
        out_shape=jax.ShapeDtypeStruct((batch, num_actions), out_dtype),
        compiler_params=pltpu.CompilerParams(
            dimension_semantics=("parallel",),   # v7x: shard batch tiles across 2 TCs
            vmem_limit_bytes=vmem_limit,
        ),
    )(x, params["w1"], params["b1"], params["w2"], params["b2"],
      params["w3"], params["b3"])

    # std = clamp(exp(log_std), 7e-4, 50): trivial (num_actions,)-sized op, done in JAX.
    std = jnp.clip(jnp.exp(params["log_std"][0]), 0.0007, 50.0)
    return mean, std


def init_params(key, observation_dim, num_actions, hidden_size,
                compute_dtype=jnp.bfloat16):
    """nn.Linear-style U(-1/sqrt(fan_in), 1/sqrt(fan_in)) init; weights stored (in, out).
    bf16 weights are the default on all TPU generations (MXU bf16-native everywhere);
    biases stay f32 (added post-accumulation)."""
    def linear(k, fan_in, fan_out):
        kw, kb = jax.random.split(k)
        bound = 1.0 / math.sqrt(fan_in)
        w = jax.random.uniform(kw, (fan_in, fan_out), jnp.float32, -bound, bound)
        b = jax.random.uniform(kb, (1, fan_out), jnp.float32, -bound, bound)
        return w.astype(compute_dtype), b

    k1, k2, k3 = jax.random.split(key, 3)
    w1, b1 = linear(k1, observation_dim, hidden_size)
    w2, b2 = linear(k2, hidden_size, hidden_size)
    w3, b3 = linear(k3, hidden_size, num_actions)
    log_std = jnp.full((1, num_actions), 0.1, jnp.float32)
    return {"w1": w1, "b1": b1, "w2": w2, "b2": b2, "w3": w3, "b3": b3,
            "log_std": log_std}


def vpg_reference(x, p):
    """Pure-JAX reference mirroring the kernel's dtype handling."""
    cd = p["w1"].dtype
    td = _tanh_dtype(cd)
    h = x.astype(cd)
    h = jnp.tanh((jnp.dot(h, p["w1"], preferred_element_type=jnp.float32)
                  + p["b1"]).astype(td)).astype(cd)
    h = jnp.tanh((jnp.dot(h, p["w2"], preferred_element_type=jnp.float32)
                  + p["b2"]).astype(td)).astype(cd)
    mean = jnp.dot(h, p["w3"], preferred_element_type=jnp.float32) + p["b3"]
    std = jnp.clip(jnp.exp(p["log_std"][0]), 0.0007, 50.0)
    return mean, std


if __name__ == "__main__":
    # TODO(synk): torch.distributions.Normal / .sample() has no Pallas equivalent;
    # the kernel returns (mean, std) which fully parameterize that distribution.
    observation_dim = 16
    num_actions = 6
    hidden_size = 64      # module default
    batch = 8

    key = jax.random.PRNGKey(0)
    k_p, k_x = jax.random.split(key)
    x = jax.random.normal(k_x, (batch, observation_dim), jnp.float32)

    # ---- exact f32 path (tight tolerance vs reference) ----
    p_f32 = init_params(k_p, observation_dim, num_actions, hidden_size, jnp.float32)
    mean, std = jax.block_until_ready(vpg_forward(x, p_f32))
    ref_mean, ref_std = vpg_reference(x, p_f32)
    assert mean.shape == (batch, num_actions), mean.shape
    assert std.shape == (num_actions,), std.shape
    assert jnp.allclose(mean, ref_mean, atol=1e-5, rtol=1e-5), (mean, ref_mean)
    assert jnp.allclose(std, ref_std, atol=1e-6, rtol=1e-6), (std, ref_std)

    # ---- default bf16 path (halves x/weight HBM bytes; bf16 tanh on v6e/v7x) ----
    p_bf16 = init_params(k_p, observation_dim, num_actions, hidden_size)
    mean_b, _ = jax.block_until_ready(vpg_forward(x, p_bf16))
    ref_mean_b, _ = vpg_reference(x, p_bf16)
    assert jnp.allclose(mean_b, ref_mean_b, atol=2e-2, rtol=2e-2), (mean_b, ref_mean_b)

    # ---- ragged batch (not a multiple of 8): no wrapper-side pad, Pallas masks OOB rows ----
    x_r = jax.random.normal(k_x, (batch + 5, observation_dim), jnp.float32)
    mean_r, _ = jax.block_until_ready(vpg_forward(x_r, p_f32))
    ref_r, _ = vpg_reference(x_r, p_f32)
    assert mean_r.shape == (batch + 5, num_actions), mean_r.shape
    assert jnp.allclose(mean_r, ref_r, atol=1e-5, rtol=1e-5), (mean_r, ref_r)

    print("KERNEL_OK")
</pallas_src>

<mosaic_0001>
module attributes {stable_mosaic.version = 11 : i64} {
  func.func @vpg_mean_kernel(%arg0: i32, %arg1: memref<8x16xf32, #tpu.memory_space<vmem>>, %arg2: memref<16x64xf32, #tpu.memory_space<vmem>>, %arg3: memref<1x64xf32, #tpu.memory_space<vmem>>, %arg4: memref<64x64xf32, #tpu.memory_space<vmem>>, %arg5: memref<1x64xf32, #tpu.memory_space<vmem>>, %arg6: memref<64x6xf32, #tpu.memory_space<vmem>>, %arg7: memref<1x6xf32, #tpu.memory_space<vmem>>, %arg8: memref<8x6xf32, #tpu.memory_space<vmem>>) attributes {dimension_semantics = [#tpu.dimension_semantics<parallel>], iteration_bounds = array<i64: 1>, scalar_prefetch = 0 : i64, scratch_operands = 0 : i64, tpu.core_type = #tpu.core_type<tc>, window_params = [{transform_indices = @transform_0, window_bounds = array<i64: 8, 16>}, {pipeline_mode = #tpu.pipeline_mode<synchronous>, transform_indices = @transform_1, window_bounds = array<i64: 16, 64>}, {pipeline_mode = #tpu.pipeline_mode<synchronous>, transform_indices = @transform_2, window_bounds = array<i64: 1, 64>}, {pipeline_mode = #tpu.pipeline_mode<synchronous>, transform_indices = @transform_3, window_bounds = array<i64: 64, 64>}, {pipeline_mode = #tpu.pipeline_mode<synchronous>, transform_indices = @transform_4, window_bounds = array<i64: 1, 64>}, {pipeline_mode = #tpu.pipeline_mode<synchronous>, transform_indices = @transform_5, window_bounds = array<i64: 64, 6>}, {pipeline_mode = #tpu.pipeline_mode<synchronous>, transform_indices = @transform_6, window_bounds = array<i64: 1, 6>}, {transform_indices = @transform_7, window_bounds = array<i64: 8, 6>}]} {
    %c0 = arith.constant 0 : index
    %c0_0 = arith.constant 0 : index
    %0 = vector.load %arg1[%c0, %c0_0] : memref<8x16xf32, #tpu.memory_space<vmem>>, vector<8x16xf32>
    %c0_1 = arith.constant 0 : index
    %c0_2 = arith.constant 0 : index
    %1 = vector.load %arg2[%c0_1, %c0_2] : memref<16x64xf32, #tpu.memory_space<vmem>>, vector<16x64xf32>
    %cst = arith.constant dense<0.000000e+00> : vector<8x64xf32>
    %2 = tpu.matmul %0, %1, %cst {dimension_numbers = #tpu.dot_dimension_numbers<[1], [0], [0], [1], [0, 0, 1, 1], [], []>} : vector<8x16xf32>, vector<16x64xf32>, vector<8x64xf32> -> vector<8x64xf32>
    %c0_3 = arith.constant 0 : index
    %c0_4 = arith.constant 0 : index
    %3 = vector.load %arg3[%c0_3, %c0_4] : memref<1x64xf32, #tpu.memory_space<vmem>>, vector<1x64xf32>
    %4 = vector.broadcast %3 : vector<1x64xf32> to vector<8x64xf32>
    %5 = arith.addf %2, %4 : vector<8x64xf32>
    %6 = math.tanh %5 : vector<8x64xf32>
    %c0_5 = arith.constant 0 : index
    %c0_6 = arith.constant 0 : index
    %7 = vector.load %arg4[%c0_5, %c0_6] : memref<64x64xf32, #tpu.memory_space<vmem>>, vector<64x64xf32>
    %cst_7 = arith.constant dense<0.000000e+00> : vector<8x64xf32>
    %8 = tpu.matmul %6, %7, %cst_7 {dimension_numbers = #tpu.dot_dimension_numbers<[1], [0], [0], [1], [0, 0, 1, 1], [], []>} : vector<8x64xf32>, vector<64x64xf32>, vector<8x64xf32> -> vector<8x64xf32>
    %c0_8 = arith.constant 0 : index
    %c0_9 = arith.constant 0 : index
    %9 = vector.load %arg5[%c0_8, %c0_9] : memref<1x64xf32, #tpu.memory_space<vmem>>, vector<1x64xf32>
    %10 = vector.broadcast %9 : vector<1x64xf32> to vector<8x64xf32>
    %11 = arith.addf %8, %10 : vector<8x64xf32>
    %12 = math.tanh %11 : vector<8x64xf32>
    %c0_10 = arith.constant 0 : index
    %c0_11 = arith.constant 0 : index
    %13 = vector.load %arg6[%c0_10, %c0_11] : memref<64x6xf32, #tpu.memory_space<vmem>>, vector<64x6xf32>
    %cst_12 = arith.constant dense<0.000000e+00> : vector<8x6xf32>
    %14 = tpu.matmul %12, %13, %cst_12 {dimension_numbers = #tpu.dot_dimension_numbers<[1], [0], [0], [1], [0, 0, 1, 1], [], []>} : vector<8x64xf32>, vector<64x6xf32>, vector<8x6xf32> -> vector<8x6xf32>
    %c0_13 = arith.constant 0 : index
    %c0_14 = arith.constant 0 : index
    %15 = vector.load %arg7[%c0_13, %c0_14] : memref<1x6xf32, #tpu.memory_space<vmem>>, vector<1x6xf32>
    %16 = vector.broadcast %15 : vector<1x6xf32> to vector<8x6xf32>
    %17 = arith.addf %14, %16 : vector<8x6xf32>
    %c0_15 = arith.constant 0 : index
    %c0_16 = arith.constant 0 : index
    %18 = vector.load %arg8[%c0_15, %c0_16] : memref<8x6xf32, #tpu.memory_space<vmem>>, vector<8x6xf32>
    tpu.vector_store %arg8[%c0_15, %c0_16], %17 {strides = array<i32>} : memref<8x6xf32, #tpu.memory_space<vmem>>, vector<8x6xf32>,
    return
  }
  func.func @transform_0(%arg0: i32) -> (i32, i32) {
    %c0_i32 = arith.constant 0 : i32
    %c0_i32_0 = arith.constant 0 : i32
    return %arg0, %c0_i32 : i32, i32
  }
  func.func @transform_1(%arg0: i32) -> (i32, i32) {
    %c0_i32 = arith.constant 0 : i32
    %c0_i32_0 = arith.constant 0 : i32
    %c0_i32_1 = arith.constant 0 : i32
    return %c0_i32, %c0_i32_0 : i32, i32
  }
  func.func @transform_2(%arg0: i32) -> (i32, i32) {
    %c0_i32 = arith.constant 0 : i32
    %c0_i32_0 = arith.constant 0 : i32
    %c0_i32_1 = arith.constant 0 : i32
    return %c0_i32, %c0_i32_0 : i32, i32
  }
  func.func @transform_3(%arg0: i32) -> (i32, i32) {
    %c0_i32 = arith.constant 0 : i32
    %c0_i32_0 = arith.constant 0 : i32
    %c0_i32_1 = arith.constant 0 : i32
    return %c0_i32, %c0_i32_0 : i32, i32
  }
  func.func @transform_4(%arg0: i32) -> (i32, i32) {
    %c0_i32 = arith.constant 0 : i32
    %c0_i32_0 = arith.constant 0 : i32
    %c0_i32_1 = arith.constant 0 : i32
    return %c0_i32, %c0_i32_0 : i32, i32
  }
  func.func @transform_5(%arg0: i32) -> (i32, i32) {
    %c0_i32 = arith.constant 0 : i32
    %c0_i32_0 = arith.constant 0 : i32
    %c0_i32_1 = arith.constant 0 : i32
    return %c0_i32, %c0_i32_0 : i32, i32
  }
  func.func @transform_6(%arg0: i32) -> (i32, i32) {
    %c0_i32 = arith.constant 0 : i32
    %c0_i32_0 = arith.constant 0 : i32
    %c0_i32_1 = arith.constant 0 : i32
    return %c0_i32, %c0_i32_0 : i32, i32
  }
  func.func @transform_7(%arg0: i32) -> (i32, i32) {
    %c0_i32 = arith.constant 0 : i32
    %c0_i32_0 = arith.constant 0 : i32
    return %arg0, %c0_i32 : i32, i32
  }
}

</mosaic_0001>

<bundles_post_ra>
// kernel: tpu_custom_call.1
= control target key start
LH: loop header
LB: loop body
LE: loop exit
PB: predicated region body
PF: predicated region fallthrough
CT: control target
= control target key end

     0   :  { %12 = vsyncpa [#allocation3], 0  ;;  %s612_s0 = inlined_call_operand.hbm [shape: f32[8,16], index: 0, kind: input, shape index: {}]   ;;  %s613_s1 = inlined_call_operand.vmem [shape: f32[16,64], index: 1, kind: input, shape index: {}]   ;;  %s614_s2 = inlined_call_operand.vmem [shape: f32[1,64], index: 2, kind: input, shape index: {}]   ;;  %s615_s3 = inlined_call_operand.vmem [shape: f32[64,64], index: 3, kind: input, shape index: {}]   ;;  %s616_s4 = inlined_call_operand.vmem [shape: f32[1,64], index: 4, kind: input, shape index: {}]   ;;  %s617_s5 = inlined_call_operand.vmem [shape: f32[64,6], index: 5, kind: input, shape index: {}]   ;;  %s618_s6 = inlined_call_operand.vmem [shape: f32[1,6], index: 6, kind: input, shape index: {}]   ;;  %s619_s7 = inlined_call_operand.hbm [shape: f32[8,6], index: 7, kind: output, shape index: {}]  }
   0x1   :  { %13 = vsyncpa [#allocation4], 0  ;;  %s475_s24 = smov [#allocation2]   ;;  %s427_s28 = scalar_lea.hbm %s612_s0, 128 }
   0x2   :  { %s20_s25 = sshll.u32 %s475_s24, 4  ;;  %p428_p0 = scmp.ne.s32.totalorder %s612_s0, %s427_s28  ;;  %s21_s25 = int_to_ptr.vmem [resolvable:$true] %s20_s25 }
   0x3   :  { %p431_p1 = scmp.lt.u32.totalorder %s427_s28, %s612_s0 }
   0x5   :  { %p433_p2 = pnand %p431_p1, %p428_p0 }
   0x7   :  { %436 = shalt.err (!%p433_p2)
}
   0x8   :  { %s437_s10 = scalar_lea.vmem %s21_s25, 128  ;;  %p442_p4 = scmp.lt.s32.totalorder %s21_s25, %s21_s25 }
   0x9   :  { %p438_p3 = scmp.ne.s32.totalorder %s21_s25, %s437_s10  ;;  %p443_p5 = scmp.lt.s32.totalorder %s437_s10, %s437_s10 }
   0xb   :  { %p444_p6 = por %p443_p5, %p442_p4 }
   0xd   :  { %p445_p7 = pnand %p444_p6, %p438_p3 }
   0xf   :  { %448 = shalt.err (!%p445_p7)
}
  0x10   :  { %23 = dma.hbm_to_vmem [thread:$0]  %s612_s0, 128, %s21_s25, [#allocation3]  }
  0x11   :  { %471 = dma.done.wait [#allocation3], 128  }
  0x12   :  { %472 = vsyncadd [#allocation3], 4294967168  ;;  %v476_v0 = vmov 0.0|0.0   ;;  %vm477_vm0 = vmmov 0   ;;  %v478_v1 = vmov 0.0   ;;  %v40_v2 = vld [vmem:[%s613_s1] sm:$0xff] }
  0x13   :  { %391 = vmatprep.subr.bf16.mxu0 %v476_v0  ;;  %350 = vmatprep.mubr.msk.f32.mxu0 %vm477_vm0, %v478_v1  ;;  %v41_v3 = vld [vmem:[%s613_s1 + $0x8] sm:$0xff]  ;;  %v124_v5 = vld [vmem:[%s615_s3] sm:$0xff]  ;;  %vm49_vm1 = vcmask 130048   ;;  %v126_v9 = vld [vmem:[%s615_s3 + $0x10] sm:$0xff]  ;;  %vm139_vm2 = vcmask 523264   ;;  %vm302_vm3 = vcmask 48128  }
  0x14   :  { %394 = vmatprep.subr.bf16.mxu1 %v476_v0  ;;  %369 = vmatprep.mubr.msk.f32.mxu1 %vm477_vm0, %v478_v1  ;;  %v392_v4 = vpack.c.bf16 %v41_v3, %v40_v2  ;;  %v125_v6 = vld [vmem:[%s615_s3 + $0x8] sm:$0xff]  ;;  %v39_v8 = vld [vmem:[#allocation2] sm:$0xff]  ;;  %v127_v10 = vld [vmem:[%s615_s3 + $0x18] sm:$0xff] }
  0x15   :  { %v395_v7 = vpack.c.bf16 %v125_v6, %v124_v5  ;;  %v398_v11 = vpack.c.bf16 %v127_v10, %v126_v9  ;;  %v128_v12 = vld [vmem:[%s615_s3 + $0x20] sm:$0xff]  ;;  %v129_v13 = vld [vmem:[%s615_s3 + $0x28] sm:$0xff]  ;;  %v130_v15 = vld [vmem:[%s615_s3 + $0x30] sm:$0xff] }
  0x16   :  { %393 = vmatpush3.bf16.msra.mxu0 %v392_v4  ;;  %v401_v14 = vpack.c.bf16 %v129_v13, %v128_v12  ;;  %v131_v16 = vld [vmem:[%s615_s3 + $0x38] sm:$0xff]  ;;  %v214_v18 = vld [vmem:[%s617_s5] sm:$0xff]  ;;  %v215_v19 = vld [vmem:[%s617_s5 + $0x8] sm:$0xff] }
  0x17   :  { %396 = vmatpush3.bf16.msra.mxu1 %v395_v7  ;;  %406 = vmatprep.subr.bf16.mxu0 %v476_v0  ;;  %v404_v17 = vpack.c.bf16 %v131_v16, %v130_v15  ;;  %v407_v20 = vpack.c.bf16 %v215_v19, %v214_v18  ;;  %v319_v21 = vld [vmem:[%s614_s2] ss:$0 sm:$0xff]  ;;  %v216_v26 = vld [vmem:[%s617_s5 + $0x10] sm:$0xff]  ;;  %v217_v27 = vld [vmem:[%s617_s5 + $0x18] sm:$0xff] }
  0x18   :  { %397 = vmatprep.subr.bf16.mxu1 %v476_v0  ;;  %v410_v28 = vpack.c.bf16 %v217_v27, %v216_v26  ;;  %v218_v29 = vld [vmem:[%s617_s5 + $0x20] sm:$0xff]  ;;  %v219_v30 = vld [vmem:[%s617_s5 + $0x28] sm:$0xff]  ;;  %v220_v32 = vld [vmem:[%s617_s5 + $0x30] sm:$0xff] }
  0x19   :  { %351 = vmatmul.mubr.msk.f32.vlgmr.msra.gmra.mrb[0].mxu0 %vm49_vm1, %v39_v8  ;;  %v413_v31 = vpack.c.bf16 %v219_v30, %v218_v29  ;;  %v221_v33 = vld [vmem:[%s617_s5 + $0x38] sm:$0xff]  ;;  %v321_v35 = vld [vmem:[%s616_s4] ss:$0 sm:$0xff]  ;;  %s479_s5 = smov [#allocation5]  }
  0x1a   :  { %388 = vmatprep.mubr.msk.f32.mxu0 %vm477_vm0, %v478_v1  ;;  %408 = vmatpush3.bf16.msra.mxu0 %v407_v20  ;;  %v416_v34 = vpack.c.bf16 %v221_v33, %v220_v32  ;;  %v323_v40 = vld [vmem:[%s618_s6] ss:$0 sm:$0xff]  ;;  %s310_s26 = sshll.u32 %s479_s5, 4  ;;  %s311_s26 = int_to_ptr.vmem [resolvable:$true] %s310_s26 }
  0x1b   :  { %399 = vmatpush3.bf16.msra.mxu1 %v398_v11  ;;  %409 = vmatprep.subr.bf16.mxu0 %v476_v0  ;;  %s449_s4 = scalar_lea.vmem %s311_s26, 128  ;;  %p454_p9 = scmp.lt.s32.totalorder %s311_s26, %s311_s26 }
  0x1c   :  { %400 = vmatprep.subr.bf16.mxu1 %v476_v0  ;;  %p450_p8 = scmp.ne.s32.totalorder %s311_s26, %s449_s4  ;;  %p455_p10 = scmp.lt.s32.totalorder %s449_s4, %s449_s4 }
  0x1e   :  { %411 = vmatpush3.bf16.msra.mxu0 %v410_v28  ;;  %p456_p11 = por %p455_p10, %p454_p9 }
  0x1f   :  { %402 = vmatpush3.bf16.msra.mxu1 %v401_v14  ;;  %412 = vmatprep.subr.bf16.mxu0 %v476_v0 }
  0x20   :  { %403 = vmatprep.subr.bf16.mxu1 %v476_v0  ;;  %p457_p12 = pnand %p456_p11, %p450_p8 }
  0x22   :  { %414 = vmatpush3.bf16.msra.mxu0 %v413_v31 }
  0x23   :  { %405 = vmatpush3.bf16.msra.mxu1 %v404_v17  ;;  %415 = vmatprep.subr.bf16.mxu0 %v476_v0 }
  0x26   :  { %417 = vmatpush3.bf16.msra.mxu0 %v416_v34 }
  0xec   :  { %v119_v22 = vpop.f32.mrb[0].mxu0 }
  0xed   :  { %v120_v23 = vadd.f32 %v319_v21, %v119_v22  ;;  %v352_v24 = vpop.f32.mrb[1].mxu0 }
  0xef   :  { %423 = vtanh.f32 %v120_v23 }
  0xf9   :  { %v424_v25 = vpop.eup %423 }
  0xfa   :  { %370 = vmatmul.mubr.msk.f32.vlgmr.msra.gmra.mrb[0].mxu1 %vm139_vm2, %v424_v25 }
 0x1cd   :  { %v209_v36 = vpop.f32.mrb[0].mxu1 }
 0x1ce   :  { %v210_v37 = vadd.f32 %v321_v35, %v209_v36  ;;  %v371_v38 = vpop.f32.mrb[1].mxu1 }
 0x1d0   :  { %425 = vtanh.f32 %v210_v37 }
 0x1da   :  { %v426_v39 = vpop.eup %425 }
 0x1db   :  { %389 = vmatmul.mubr.msk.f32.vlgmr.msra.gmra.mrb[2].mxu0 %vm139_vm2, %v426_v39 }
 0x2ae   :  { %v298_v41 = vpop.f32.mrb[2].mxu0 }
 0x2af   :  { %v299_v42 = vadd.f32 %v323_v40, %v298_v41  ;;  %v390_v43 = vpop.f32.mrb[3].mxu0 }
 0x2b1   :  { %303 = vst.msk [vmem:[#allocation5] sm:$0xff] %vm302_vm3, %v299_v42 }
 0x2b2   :  { %460 = shalt.err (!%p457_p12)
}
 0x2b3   :  { %s461_s29 = scalar_lea.hbm %s619_s7, 128 }
 0x2b4   :  { %p462_p13 = scmp.ne.s32.totalorder %s619_s7, %s461_s29  ;;  %p465_p0 = scmp.lt.u32.totalorder %s461_s29, %s619_s7 }
 0x2b6   :  { %p467_p1 = pnand %p465_p0, %p462_p13 }
 0x2b8   :  { %470 = shalt.err (!%p467_p1)
}
 0x2b9   :  { %313 = dma.vmem_to_hbm [thread:$0]  %s311_s26, 128, %s619_s7, [#allocation4]  }
 0x2ba   :  { %473 = dma.done.wait [#allocation4], 128  }
 0x2bb   :  { %474 = vsyncadd [#allocation4], 4294967168 }
 0x2bc   :  { %317 = vsyncpa [#allocation3], 1 }
 0x2bd   :  { %318 = vsyncpa [#allocation4], 1 }

</bundles_post_ra>
